<compile_context>
chip_gen: v6e
topology: v6e:2x2x1
jax: 0.10.0
libtpu: 0.0.40
codegen_flags: <defaults>
</compile_context>

<pallas_src>
import functools

import jax
import jax.numpy as jnp
from jax.experimental import pallas as pl
from jax.experimental.pallas import tpu as pltpu

LRELU_SLOPE = 0.2


# ----------------------------------------------------------------------------
# VMEM sizing helpers
# ----------------------------------------------------------------------------
@functools.lru_cache(maxsize=1)
def _vmem_limit_bytes():
    """Scoped-VMEM limit: 3/4 of physical VMEM (48 MiB on v7x, 96 MiB v5e/v6e)."""
    try:
        return int(pltpu.get_tpu_info().vmem_capacity_bytes * 3 // 4)
    except Exception:  # fall back to the compiler default
        return None


def _pick_row_tile(H, W, cin, cout, bpe, n_res, budget_bytes=8 * 1024 * 1024):
    """Largest row-tile TH dividing H whose double-buffered tiles fit the budget.

    Conservative so that even on v7x (64 MiB physical VMEM) and v5e (16 MiB
    default scoped VMEM) the pipeline keeps full double-buffering.
    """
    best = 1
    for th in range(1, H + 1):
        if H % th:
            continue
        in_b = (th + 2) * (W + 2) * cin * bpe          # haloed input slabs
        out_b = th * W * cout * bpe                     # output tile
        res_b = n_res * th * W * cout * bpe             # fused residual tiles
        acc_b = th * W * cout * 4                       # f32 accumulator
        if 2 * (in_b + out_b + res_b) + acc_b <= budget_bytes:
            best = th
    return best


# ----------------------------------------------------------------------------
# Fused conv3x3 Pallas kernel
# ----------------------------------------------------------------------------
def _make_conv_kernel(slab_channels, res_scales, conv_scale, leaky, TH, W, Cout):
    n_slab = len(slab_channels)
    n_res = len(res_scales)

    def kernel(*refs):
        w_ref, b_ref = refs[0], refs[1]
        slab_refs = refs[2:2 + 3 * n_slab]
        res_refs = refs[2 + 3 * n_slab:2 + 3 * n_slab + n_res]
        o_ref = refs[-1]

        r = pl.program_id(1)
        not_first = r > 0
        not_last = r < pl.num_programs(1) - 1

        acc = jnp.zeros((TH * W, Cout), jnp.float32)
        koff = 0
        for s in range(n_slab):
            cs = slab_channels[s]
            top_ref, mid_ref, bot_ref = slab_refs[3 * s:3 * s + 3]
            # 1-row halos from the neighbouring row tiles; zero them at the
            # image border (this realizes the conv's padding=1 in H).
            top = jnp.where(not_first, top_ref[0], jnp.zeros_like(top_ref[0]))
            bot = jnp.where(not_last, bot_ref[0], jnp.zeros_like(bot_ref[0]))
            x = jnp.concatenate([top, mid_ref[0], bot], axis=0)   # (TH+2, W, cs)
            zc = jnp.zeros((TH + 2, 1, cs), x.dtype)
            x = jnp.concatenate([zc, x, zc], axis=1)              # (TH+2, W+2, cs)
            for kh in range(3):
                rows = x[kh:kh + TH]                               # (TH, W+2, cs)
                # Merge the three kw taps into a single K = 3*cs contraction.
                patch = jnp.concatenate(
                    [rows[:, 0:W, :], rows[:, 1:W + 1, :], rows[:, 2:W + 2, :]],
                    axis=-1).reshape(TH * W, 3 * cs)
                acc = acc + jnp.dot(patch, w_ref[kh, koff:koff + 3 * cs, :],
                                    preferred_element_type=jnp.float32)
            koff += 3 * cs

        # Epilogue in f32: bias, LeakyReLU, conv scale, fused residual adds.
        acc = acc + b_ref[...].astype(jnp.float32)
        if leaky:
            acc = jnp.where(acc >= 0, acc, LRELU_SLOPE * acc)
        if conv_scale != 1.0:
            acc = acc * conv_scale
        out = acc.reshape(TH, W, Cout)
        for t in range(n_res):
            out = out + res_scales[t] * res_refs[t][0].astype(jnp.float32)
        o_ref[0] = out.astype(o_ref.dtype)

    return kernel


def conv3x3_fused(inputs, w, b, *, leaky=False, conv_scale=1.0, residuals=(),
                  row_tile=None, out_dtype=None):
    """Fused 3x3 'same' conv: sum_i s_i*res_i + conv_scale*act(conv(inputs)+b).

    inputs:    list of NHWC slabs, treated as the channel-concatenation
               [inputs[0] | inputs[1] | ...] without ever materializing it.
    w:         (3, 3, sum(Cin_i), Cout) HWIO weights.
    b:         (Cout,) bias.
    residuals: sequence of (tensor (N,H,W,Cout), scale) fused into the epilogue.
    """
    inputs = list(inputs)
    N, H, W, _ = inputs[0].shape
    Cout = int(w.shape[3])
    slab_channels = tuple(int(x.shape[3]) for x in inputs)
    Cin = sum(slab_channels)
    assert tuple(w.shape[:3]) == (3, 3, Cin), (w.shape, slab_channels)

    res_arrays = [ra for ra, _ in residuals]
    res_scales = tuple(float(s) for _, s in residuals)
    for ra in res_arrays:
        assert ra.shape == (N, H, W, Cout), (ra.shape, (N, H, W, Cout))
    out_dtype = out_dtype or inputs[0].dtype

    # Weight layout: (3, 3*Cin, Cout), grouped [slab][kw][ci] so it matches the
    # in-kernel merged-kw patches (one K = 3*C_s matmul per slab per kh).
    parts, off = [], 0
    for c in slab_channels:
        parts.append(w[:, :, off:off + c, :].reshape(3, 3 * c, Cout))
        off += c
    wm = jnp.concatenate(parts, axis=1).astype(inputs[0].dtype)
    b2 = b.reshape(1, Cout).astype(jnp.float32)

    bpe = jnp.dtype(inputs[0].dtype).itemsize
    TH = int(row_tile) if row_tile else _pick_row_tile(
        H, W, Cin, Cout, bpe, len(res_arrays))
    assert H % TH == 0, (H, TH)
    nr = H // TH

    def mid_map(n, r):
        return (n, r, 0, 0)

    def top_map(n, r):   # row r*TH - 1, clamped (masked to zero at r == 0)
        return (n, jnp.maximum(r * TH - 1, 0), 0, 0)

    def bot_map(n, r):   # row r*TH + TH, clamped (masked at the last row tile)
        return (n, jnp.minimum(r * TH + TH, H - 1), 0, 0)

    in_specs = [
        pl.BlockSpec((3, 3 * Cin, Cout), lambda n, r: (0, 0, 0)),
        pl.BlockSpec((1, Cout), lambda n, r: (0, 0)),
    ]
    args = [wm, b2]
    for x, c in zip(inputs, slab_channels):
        in_specs += [pl.BlockSpec((1, 1, W, c), top_map),
                     pl.BlockSpec((1, TH, W, c), mid_map),
                     pl.BlockSpec((1, 1, W, c), bot_map)]
        args += [x, x, x]
    for ra in res_arrays:
        in_specs.append(pl.BlockSpec((1, TH, W, Cout), mid_map))
        args.append(ra)

    kernel = _make_conv_kernel(slab_channels, res_scales, float(conv_scale),
                               bool(leaky), TH, W, Cout)

    return pl.pallas_call(
        kernel,
        out_shape=jax.ShapeDtypeStruct((N, H, W, Cout), out_dtype),
        grid=(N, nr),
        in_specs=in_specs,
        out_specs=pl.BlockSpec((1, TH, W, Cout), mid_map),
        compiler_params=pltpu.CompilerParams(
            dimension_semantics=("parallel", "parallel"),
            vmem_limit_bytes=_vmem_limit_bytes()),
    )(*args)


# ----------------------------------------------------------------------------
# Model glue: parameters, dense blocks, RRDB, pixel shuffle, forward pass
# ----------------------------------------------------------------------------
def _conv_params(key, cin, cout, scale=1.0):
    std = scale * (2.0 / (9.0 * cin)) ** 0.5
    return {"w": std * jax.random.normal(key, (3, 3, cin, cout), jnp.float32),
            "b": jnp.zeros((cout,), jnp.float32)}


def init_generator_params(key, n, num, nf=64, gc=32):
    ctr = [0]

    def nk():
        ctr[0] += 1
        return jax.random.fold_in(key, ctr[0])

    p = {"first": _conv_params(nk(), 3, nf)}
    cins = [nf, nf + gc, nf + 2 * gc, nf + 3 * gc, nf + 4 * gc]
    couts = [gc, gc, gc, gc, nf]
    rrdbs = []
    for _ in range(num):
        rdbs = []
        for _ in range(3):
            rdbs.append([_conv_params(nk(), ci, co, scale=0.1)
                         for ci, co in zip(cins, couts)])
        rrdbs.append(rdbs)
    p["rrdbs"] = rrdbs
    p["trunk"] = _conv_params(nk(), nf, nf)
    p["shuffle"] = _conv_params(nk(), nf, nf * n * n)
    p["last1"] = _conv_params(nk(), nf, nf)
    p["last2"] = _conv_params(nk(), nf, 3)
    return p


def _dense_feats(x, convs):
    """Convs 1..4 of a dense block; the channel concat is implicit (slab list)."""
    feats = [x]
    for i in range(4):
        feats.append(conv3x3_fused(feats, convs[i]["w"], convs[i]["b"],
                                   leaky=True))
    return feats


def dense_block(x, convs, beta):
    feats = _dense_feats(x, convs)
    # out = x + beta * conv5(feats)   (residual fused into the conv epilogue)
    return conv3x3_fused(feats, convs[4]["w"], convs[4]["b"],
                         conv_scale=beta, residuals=[(x, 1.0)])


def rrdb(x, rdbs, beta):
    d1 = dense_block(x, rdbs[0], beta)
    d2 = dense_block(d1, rdbs[1], beta)
    feats = _dense_feats(d2, rdbs[2])
    # Third dense block's residual AND the RRDB-level residual fused into one
    # epilogue:  rrdb_out = x + beta*(d2 + beta*conv5) = x + beta*d2 + beta^2*conv5
    return conv3x3_fused(feats, rdbs[2][4]["w"], rdbs[2][4]["b"],
                         conv_scale=beta * beta,
                         residuals=[(x, 1.0), (d2, beta)])


def pixel_shuffle_nhwc(x, r):
    # TODO(synk): fold this permutation into the shuffle-conv output BlockSpec
    # so the (N,H,W,64*n^2) tensor never round-trips HBM (needs a transposed /
    # strided in-kernel store; kept in XLA for lowering robustness).
    N, H, W, Crr = x.shape
    C = Crr // (r * r)
    x = x.reshape(N, H, W, C, r, r)
    x = x.transpose(0, 1, 4, 2, 5, 3)
    return x.reshape(N, H * r, W * r, C)


def generator_forward_nhwc(params, x, n, beta):
    o1 = conv3x3_fused([x], params["first"]["w"], params["first"]["b"])
    t = o1
    for rdbs in params["rrdbs"]:
        t = rrdb(t, rdbs, beta)
    # trunk conv fused with  o2 = o1 + BBs(o1)
    o2 = conv3x3_fused([t], params["trunk"]["w"], params["trunk"]["b"],
                       residuals=[(o1, 1.0)])
    # Shuffle: conv -> LeakyReLU (elementwise, commutes with the shuffle) ->
    # PixelShuffle.
    s = conv3x3_fused([o2], params["shuffle"]["w"], params["shuffle"]["b"],
                      leaky=True)
    s = pixel_shuffle_nhwc(s, n)
    out = conv3x3_fused([s], params["last1"]["w"], params["last1"]["b"])
    # TODO(synk): the Cout=3 store of the last conv is lane-sparse; fusing
    # last1+last2 (or emitting NCHW with W on the lane dim) would make the
    # final store lane-dense.
    out = conv3x3_fused([out], params["last2"]["w"], params["last2"]["b"])
    return out


def generator_forward(params, x_nchw, n, beta):
    compute_dtype = params["first"]["w"].dtype
    x = jnp.transpose(x_nchw, (0, 2, 3, 1)).astype(compute_dtype)   # NCHW->NHWC
    y = generator_forward_nhwc(params, x, n, beta).astype(x_nchw.dtype)
    return jnp.transpose(y, (0, 3, 1, 2))                           # NHWC->NCHW


# ----------------------------------------------------------------------------
# Pure-XLA reference (for correctness checks only)
# ----------------------------------------------------------------------------
def _xla_conv(x, w, b, leaky=False):
    y = jax.lax.conv_general_dilated(
        x, w, (1, 1), "SAME",
        dimension_numbers=("NHWC", "HWIO", "NHWC"),
        precision=jax.lax.Precision.HIGHEST) + b
    if leaky:
        y = jnp.where(y >= 0, y, LRELU_SLOPE * y)
    return y


def _xla_generator_nhwc(params, x, n, beta):
    def db(xi, convs):
        f = xi
        for i in range(4):
            f = jnp.concatenate(
                [f, _xla_conv(f, convs[i]["w"], convs[i]["b"], leaky=True)],
                axis=-1)
        return xi + beta * _xla_conv(f, convs[4]["w"], convs[4]["b"])

    def rr(xi, rdbs):
        out = xi
        for convs in rdbs:
            out = db(out, convs)
        return xi + beta * out

    o1 = _xla_conv(x, params["first"]["w"], params["first"]["b"])
    t = o1
    for rdbs in params["rrdbs"]:
        t = rr(t, rdbs)
    o2 = o1 + _xla_conv(t, params["trunk"]["w"], params["trunk"]["b"])
    s = _xla_conv(o2, params["shuffle"]["w"], params["shuffle"]["b"], leaky=True)
    s = pixel_shuffle_nhwc(s, n)
    out = _xla_conv(s, params["last1"]["w"], params["last1"]["b"])
    return _xla_conv(out, params["last2"]["w"], params["last2"]["b"])


# ----------------------------------------------------------------------------
if __name__ == "__main__":
    N, C, H, W = 2, 3, 16, 16
    n_scale, num_blocks, beta = 2, 2, 0.1            # small config for test

    key = jax.random.PRNGKey(0)

    # --- 1) Single-slab conv vs XLA, with forced multi-row tiling so the
    #        halo-row fetch and border-masking paths are exercised.
    ka, kwa, kba = jax.random.split(jax.random.fold_in(key, 1), 3)
    xa = jax.random.normal(ka, (2, 16, 16, 3), jnp.float32)
    wa = 0.2 * jax.random.normal(kwa, (3, 3, 3, 64), jnp.float32)
    ba = 0.1 * jax.random.normal(kba, (64,), jnp.float32)
    got_a = conv3x3_fused([xa], wa, ba, leaky=True, row_tile=4)
    ref_a = _xla_conv(xa, wa, ba, leaky=True)
    err_a = float(jnp.max(jnp.abs(got_a - ref_a)))
    assert err_a < 1e-4, f"single-slab conv mismatch: {err_a}"

    # --- 2) Multi-slab (implicit channel concat) + fused residuals vs XLA.
    ks = jax.random.split(jax.random.fold_in(key, 2), 6)
    s0 = jax.random.normal(ks[0], (2, 16, 16, 16), jnp.float32)
    s1 = jax.random.normal(ks[1], (2, 16, 16, 8), jnp.float32)
    wb = 0.1 * jax.random.normal(ks[2], (3, 3, 24, 16), jnp.float32)
    bb = 0.1 * jax.random.normal(ks[3], (16,), jnp.float32)
    r1 = jax.random.normal(ks[4], (2, 16, 16, 16), jnp.float32)
    r2 = jax.random.normal(ks[5], (2, 16, 16, 16), jnp.float32)
    got_b = conv3x3_fused([s0, s1], wb, bb, conv_scale=0.3,
                          residuals=[(r1, 1.0), (r2, 0.25)], row_tile=8)
    ref_b = r1 + 0.25 * r2 + 0.3 * _xla_conv(
        jnp.concatenate([s0, s1], axis=-1), wb, bb)
    err_b = float(jnp.max(jnp.abs(got_b - ref_b)))
    assert err_b < 1e-4, f"fused multi-slab conv mismatch: {err_b}"

    # --- 3) Full generator: Pallas (f32) vs XLA reference, then a bf16 run.
    kx, kp = jax.random.split(jax.random.fold_in(key, 3))
    x = jax.random.normal(kx, (N, C, H, W), jnp.float32)
    params = init_generator_params(kp, n=n_scale, num=num_blocks)

    fwd = jax.jit(functools.partial(generator_forward, n=n_scale, beta=beta))
    out_f32 = jax.block_until_ready(fwd(params, x))
    assert out_f32.shape == (N, 3, H * n_scale, W * n_scale), out_f32.shape

    xla_fwd = jax.jit(functools.partial(_xla_generator_nhwc, n=n_scale,
                                        beta=beta))
    ref = jnp.transpose(xla_fwd(params, jnp.transpose(x, (0, 2, 3, 1))),
                        (0, 3, 1, 2))
    err = float(jnp.max(jnp.abs(out_f32 - ref)))
    assert err < 2e-3, f"generator forward mismatch vs XLA reference: {err}"

    # bf16 weights/activations with f32 accumulation (perf mode).
    params_bf16 = jax.tree_util.tree_map(
        lambda a: a.astype(jnp.bfloat16) if a.ndim == 4 else a, params)
    out_bf16 = jax.block_until_ready(fwd(params_bf16, x))
    assert out_bf16.shape == (N, 3, H * n_scale, W * n_scale)
    assert out_bf16.dtype == jnp.float32
    assert bool(jnp.isfinite(out_bf16).all())

    print("KERNEL_OK")
</pallas_src>

<mosaic_0001>
module attributes {stable_mosaic.version = 11 : i64} {
  func.func @kernel(%arg0: i32, %arg1: i32, %arg2: memref<3x9x64xf32, #tpu.memory_space<vmem>>, %arg3: memref<1x64xf32, #tpu.memory_space<vmem>>, %arg4: memref<1x1x16x3xf32, #tpu.memory_space<vmem>>, %arg5: memref<1x4x16x3xf32, #tpu.memory_space<vmem>>, %arg6: memref<1x1x16x3xf32, #tpu.memory_space<vmem>>, %arg7: memref<1x4x16x64xf32, #tpu.memory_space<vmem>>) attributes {dimension_semantics = [#tpu.dimension_semantics<parallel>, #tpu.dimension_semantics<parallel>], iteration_bounds = array<i64: 2, 4>, scalar_prefetch = 0 : i64, scratch_operands = 0 : i64, tpu.core_type = #tpu.core_type<tc>, window_params = [{pipeline_mode = #tpu.pipeline_mode<synchronous>, transform_indices = @transform_0, window_bounds = array<i64: 3, 9, 64>}, {pipeline_mode = #tpu.pipeline_mode<synchronous>, transform_indices = @transform_1, window_bounds = array<i64: 1, 64>}, {transform_indices = @transform_2, window_bounds = array<i64: 1, 1, 16, 3>}, {transform_indices = @transform_3, window_bounds = array<i64: 1, 4, 16, 3>}, {transform_indices = @transform_4, window_bounds = array<i64: 1, 1, 16, 3>}, {transform_indices = @transform_5, window_bounds = array<i64: 1, 4, 16, 64>}]} {
    %c0_i32 = arith.constant 0 : i32
    %0 = arith.cmpi sgt, %arg1, %c0_i32 : i32
    %c3_i32 = arith.constant 3 : i32
    %1 = arith.cmpi slt, %arg1, %c3_i32 : i32
    %cst = arith.constant 0.000000e+00 : f32
    %2 = vector.broadcast %cst : f32 to vector<64x64xf32>
    %c0 = arith.constant 0 : index
    %c0_0 = arith.constant 0 : index
    %c0_1 = arith.constant 0 : index
    %c0_2 = arith.constant 0 : index
    %3 = vector.load %arg4[%c0, %c0_0, %c0_1, %c0_2] : memref<1x1x16x3xf32, #tpu.memory_space<vmem>>, vector<1x1x16x3xf32>
    %4 = vector.shape_cast %3 : vector<1x1x16x3xf32> to vector<1x16x3xf32>
    %cst_3 = arith.constant 0.000000e+00 : f32
    %5 = vector.broadcast %cst_3 : f32 to vector<1x16x3xf32>
    %6 = arith.select %0, %4, %5 : vector<1x16x3xf32>
    %c0_4 = arith.constant 0 : index
    %c0_5 = arith.constant 0 : index
    %c0_6 = arith.constant 0 : index
    %c0_7 = arith.constant 0 : index
    %7 = vector.load %arg6[%c0_4, %c0_5, %c0_6, %c0_7] : memref<1x1x16x3xf32, #tpu.memory_space<vmem>>, vector<1x1x16x3xf32>
    %8 = vector.shape_cast %7 : vector<1x1x16x3xf32> to vector<1x16x3xf32>
    %cst_8 = arith.constant 0.000000e+00 : f32
    %9 = vector.broadcast %cst_8 : f32 to vector<1x16x3xf32>
    %10 = arith.select %1, %8, %9 : vector<1x16x3xf32>
    %c0_9 = arith.constant 0 : index
    %c0_10 = arith.constant 0 : index
    %c0_11 = arith.constant 0 : index
    %c0_12 = arith.constant 0 : index
    %11 = vector.load %arg5[%c0_9, %c0_10, %c0_11, %c0_12] : memref<1x4x16x3xf32, #tpu.memory_space<vmem>>, vector<1x4x16x3xf32>
    %12 = vector.shape_cast %11 : vector<1x4x16x3xf32> to vector<4x16x3xf32>
    %13 = tpu.concatenate %6, %12, %10 in 0 : vector<1x16x3xf32>, vector<4x16x3xf32>, vector<1x16x3xf32> -> vector<6x16x3xf32>
    %cst_13 = arith.constant 0.000000e+00 : f32
    %14 = vector.broadcast %cst_13 : f32 to vector<6x1x3xf32>
    %15 = tpu.concatenate %14, %13, %14 in 1 : vector<6x1x3xf32>, vector<6x16x3xf32>, vector<6x1x3xf32> -> vector<6x18x3xf32>
    %16 = vector.extract_strided_slice %15 {offsets = [0, 0, 0], sizes = [4, 18, 3], strides = [1, 1, 1]} : vector<6x18x3xf32> to vector<4x18x3xf32>
    %17 = vector.extract_strided_slice %16 {offsets = [0, 0, 0], sizes = [4, 16, 3], strides = [1, 1, 1]} : vector<4x18x3xf32> to vector<4x16x3xf32>
    %18 = vector.extract_strided_slice %16 {offsets = [0, 1, 0], sizes = [4, 16, 3], strides = [1, 1, 1]} : vector<4x18x3xf32> to vector<4x16x3xf32>
    %19 = vector.extract_strided_slice %16 {offsets = [0, 2, 0], sizes = [4, 16, 3], strides = [1, 1, 1]} : vector<4x18x3xf32> to vector<4x16x3xf32>
    %20 = tpu.concatenate %17, %18, %19 in 2 : vector<4x16x3xf32>, vector<4x16x3xf32>, vector<4x16x3xf32> -> vector<4x16x9xf32>
    %21 = vector.shape_cast %20 : vector<4x16x9xf32> to vector<64x9xf32>
    %c0_14 = arith.constant 0 : index
    %c0_15 = arith.constant 0 : index
    %c0_16 = arith.constant 0 : index
    %22 = vector.load %arg2[%c0_14, %c0_15, %c0_16] : memref<3x9x64xf32, #tpu.memory_space<vmem>>, vector<1x9x64xf32>
    %23 = vector.shape_cast %22 : vector<1x9x64xf32> to vector<9x64xf32>
    %cst_17 = arith.constant dense<0.000000e+00> : vector<64x64xf32>
    %24 = tpu.matmul %21, %23, %cst_17 {dimension_numbers = #tpu.dot_dimension_numbers<[1], [0], [0], [1], [0, 0, 1, 1], [], []>} : vector<64x9xf32>, vector<9x64xf32>, vector<64x64xf32> -> vector<64x64xf32>
    %25 = arith.addf %2, %24 : vector<64x64xf32>
    %26 = vector.extract_strided_slice %15 {offsets = [1, 0, 0], sizes = [4, 18, 3], strides = [1, 1, 1]} : vector<6x18x3xf32> to vector<4x18x3xf32>
    %27 = vector.extract_strided_slice %26 {offsets = [0, 0, 0], sizes = [4, 16, 3], strides = [1, 1, 1]} : vector<4x18x3xf32> to vector<4x16x3xf32>
    %28 = vector.extract_strided_slice %26 {offsets = [0, 1, 0], sizes = [4, 16, 3], strides = [1, 1, 1]} : vector<4x18x3xf32> to vector<4x16x3xf32>
    %29 = vector.extract_strided_slice %26 {offsets = [0, 2, 0], sizes = [4, 16, 3], strides = [1, 1, 1]} : vector<4x18x3xf32> to vector<4x16x3xf32>
    %30 = tpu.concatenate %27, %28, %29 in 2 : vector<4x16x3xf32>, vector<4x16x3xf32>, vector<4x16x3xf32> -> vector<4x16x9xf32>
    %31 = vector.shape_cast %30 : vector<4x16x9xf32> to vector<64x9xf32>
    %c1 = arith.constant 1 : index
    %c0_18 = arith.constant 0 : index
    %c0_19 = arith.constant 0 : index
    %32 = vector.load %arg2[%c1, %c0_18, %c0_19] : memref<3x9x64xf32, #tpu.memory_space<vmem>>, vector<1x9x64xf32>
    %33 = vector.shape_cast %32 : vector<1x9x64xf32> to vector<9x64xf32>
    %cst_20 = arith.constant dense<0.000000e+00> : vector<64x64xf32>
    %34 = tpu.matmul %31, %33, %cst_20 {dimension_numbers = #tpu.dot_dimension_numbers<[1], [0], [0], [1], [0, 0, 1, 1], [], []>} : vector<64x9xf32>, vector<9x64xf32>, vector<64x64xf32> -> vector<64x64xf32>
    %35 = arith.addf %25, %34 : vector<64x64xf32>
    %36 = vector.extract_strided_slice %15 {offsets = [2, 0, 0], sizes = [4, 18, 3], strides = [1, 1, 1]} : vector<6x18x3xf32> to vector<4x18x3xf32>
    %37 = vector.extract_strided_slice %36 {offsets = [0, 0, 0], sizes = [4, 16, 3], strides = [1, 1, 1]} : vector<4x18x3xf32> to vector<4x16x3xf32>
    %38 = vector.extract_strided_slice %36 {offsets = [0, 1, 0], sizes = [4, 16, 3], strides = [1, 1, 1]} : vector<4x18x3xf32> to vector<4x16x3xf32>
    %39 = vector.extract_strided_slice %36 {offsets = [0, 2, 0], sizes = [4, 16, 3], strides = [1, 1, 1]} : vector<4x18x3xf32> to vector<4x16x3xf32>
    %40 = tpu.concatenate %37, %38, %39 in 2 : vector<4x16x3xf32>, vector<4x16x3xf32>, vector<4x16x3xf32> -> vector<4x16x9xf32>
    %41 = vector.shape_cast %40 : vector<4x16x9xf32> to vector<64x9xf32>
    %c2 = arith.constant 2 : index
    %c0_21 = arith.constant 0 : index
    %c0_22 = arith.constant 0 : index
    %42 = vector.load %arg2[%c2, %c0_21, %c0_22] : memref<3x9x64xf32, #tpu.memory_space<vmem>>, vector<1x9x64xf32>
    %43 = vector.shape_cast %42 : vector<1x9x64xf32> to vector<9x64xf32>
    %cst_23 = arith.constant dense<0.000000e+00> : vector<64x64xf32>
    %44 = tpu.matmul %41, %43, %cst_23 {dimension_numbers = #tpu.dot_dimension_numbers<[1], [0], [0], [1], [0, 0, 1, 1], [], []>} : vector<64x9xf32>, vector<9x64xf32>, vector<64x64xf32> -> vector<64x64xf32>
    %45 = arith.addf %35, %44 : vector<64x64xf32>
    %c0_24 = arith.constant 0 : index
    %c0_25 = arith.constant 0 : index
    %46 = vector.load %arg3[%c0_24, %c0_25] : memref<1x64xf32, #tpu.memory_space<vmem>>, vector<1x64xf32>
    %47 = vector.broadcast %46 : vector<1x64xf32> to vector<64x64xf32>
    %48 = arith.addf %45, %47 : vector<64x64xf32>
    %cst_26 = arith.constant 0.000000e+00 : f32
    %49 = vector.broadcast %cst_26 : f32 to vector<64x64xf32>
    %50 = arith.cmpf oge, %48, %49 : vector<64x64xf32>
    %cst_27 = arith.constant 2.000000e-01 : f32
    %51 = vector.broadcast %cst_27 : f32 to vector<64x64xf32>
    %52 = arith.mulf %51, %48 : vector<64x64xf32>
    %53 = arith.select %50, %48, %52 : vector<64x64xi1>, vector<64x64xf32>
    %54 = vector.shape_cast %53 : vector<64x64xf32> to vector<4x16x64xf32>
    %c0_28 = arith.constant 0 : index
    %c0_29 = arith.constant 0 : index
    %c0_30 = arith.constant 0 : index
    %c0_31 = arith.constant 0 : index
    %55 = vector.load %arg7[%c0_28, %c0_29, %c0_30, %c0_31] : memref<1x4x16x64xf32, #tpu.memory_space<vmem>>, vector<1x4x16x64xf32>
    %56 = vector.shape_cast %55 : vector<1x4x16x64xf32> to vector<4x16x64xf32>
    %57 = vector.shape_cast %54 : vector<4x16x64xf32> to vector<1x4x16x64xf32>
    tpu.vector_store %arg7[%c0_28, %c0_29, %c0_30, %c0_31], %57 {strides = array<i32>} : memref<1x4x16x64xf32, #tpu.memory_space<vmem>>, vector<1x4x16x64xf32>,
    return
  }
  func.func @transform_0(%arg0: i32, %arg1: i32) -> (i32, i32, i32) {
    %c0_i32 = arith.constant 0 : i32
    %c0_i32_0 = arith.constant 0 : i32
    %c0_i32_1 = arith.constant 0 : i32
    %c0_i32_2 = arith.constant 0 : i32
    return %c0_i32, %c0_i32_0, %c0_i32_1 : i32, i32, i32
  }
  func.func @transform_1(%arg0: i32, %arg1: i32) -> (i32, i32) {
    %c0_i32 = arith.constant 0 : i32
    %c0_i32_0 = arith.constant 0 : i32
    %c0_i32_1 = arith.constant 0 : i32
    return %c0_i32, %c0_i32_0 : i32, i32
  }
  func.func @transform_2(%arg0: i32, %arg1: i32) -> (i32, i32, i32, i32) {
    %c4_i32 = arith.constant 4 : i32
    %0 = arith.muli %arg1, %c4_i32 : i32
    %c1_i32 = arith.constant 1 : i32
    %1 = arith.subi %0, %c1_i32 : i32
    %c0_i32 = arith.constant 0 : i32
    %2 = arith.maxsi %1, %c0_i32 : i32
    %c0_i32_0 = arith.constant 0 : i32
    %c0_i32_1 = arith.constant 0 : i32
    %c0_i32_2 = arith.constant 0 : i32
    return %arg0, %2, %c0_i32_0, %c0_i32_1 : i32, i32, i32, i32
  }
  func.func @transform_3(%arg0: i32, %arg1: i32) -> (i32, i32, i32, i32) {
    %c0_i32 = arith.constant 0 : i32
    %c0_i32_0 = arith.constant 0 : i32
    %c0_i32_1 = arith.constant 0 : i32
    return %arg0, %arg1, %c0_i32, %c0_i32_0 : i32, i32, i32, i32
  }
  func.func @transform_4(%arg0: i32, %arg1: i32) -> (i32, i32, i32, i32) {
    %c4_i32 = arith.constant 4 : i32
    %0 = arith.muli %arg1, %c4_i32 : i32
    %c4_i32_0 = arith.constant 4 : i32
    %1 = arith.addi %0, %c4_i32_0 : i32
    %c15_i32 = arith.constant 15 : i32
    %2 = arith.minsi %1, %c15_i32 : i32
    %c0_i32 = arith.constant 0 : i32
    %c0_i32_1 = arith.constant 0 : i32
    %c0_i32_2 = arith.constant 0 : i32
    return %arg0, %2, %c0_i32, %c0_i32_1 : i32, i32, i32, i32
  }
  func.func @transform_5(%arg0: i32, %arg1: i32) -> (i32, i32, i32, i32) {
    %c0_i32 = arith.constant 0 : i32
    %c0_i32_0 = arith.constant 0 : i32
    %c0_i32_1 = arith.constant 0 : i32
    return %arg0, %arg1, %c0_i32, %c0_i32_0 : i32, i32, i32, i32
  }
}

</mosaic_0001>

<bundles_post_ra>
// kernel: tpu_custom_call.1
= control target key start
LH: loop header
LB: loop body
LE: loop exit
PB: predicated region body
PF: predicated region fallthrough
CT: control target
= control target key end

     0   :  { %10 = vsyncpa [#allocation3], 0  ;;  %s2014_s0 = inlined_call_operand.vmem [shape: f32[3,9,64], index: 0, kind: input, shape index: {}]   ;;  %s2015_s1 = inlined_call_operand.vmem [shape: f32[1,64], index: 1, kind: input, shape index: {}]   ;;  %s2016_s2 = inlined_call_operand.vmem [shape: f32[2,16,16,3], index: 2, kind: input, shape index: {}]   ;;  %s2017_s3 = inlined_call_operand.vmem [shape: f32[2,16,16,3], index: 3, kind: input, shape index: {}]   ;;  %s2018_s4 = inlined_call_operand.vmem [shape: f32[2,16,16,3], index: 4, kind: input, shape index: {}]   ;;  %s2019_s5 = inlined_call_operand.hbm [shape: f32[2,16,16,64], index: 5, kind: output, shape index: {}]  }
   0x1   :  { %12 = vsyncpa [#allocation3 + $0x1], 0  ;;  %s1580_s18 = smov 0   ;;  %s1582_s19 = smov 0  }
   0x2   :  { %s1584_s20 = smov 0   ;;  %s1586_s21 = smov 0  }
   0x3   :  { %s1588_s22 = smov 0   ;;  %s1590_s23 = smov 0  }
   0x4   :  { %s1592_s24 = smov 0   ;;  %s1594_s25 = smov 0  }
   0x5 LB: > { %s1207_s26 = sadd.s32 4294967295, %s1543_s25   ;;  %s1208_s27 = sadd.s32 4294967294, %s1543_s25   ;;  %s1543_s25 = sphi %s1594_s25, %s18_s25   ;;  %s1539_s24 = sphi %s1592_s24, %s2035_s24   ;;  %s1535_s23 = sphi %s1590_s23, %s2034_s23   ;;  %s1531_s22 = sphi %s1588_s22, %s2033_s22   ;;  %s1527_s21 = sphi %s1586_s21, %s2032_s21   ;;  %s1523_s20 = sphi %s1584_s20, %s2031_s20   ;;  %s1519_s19 = sphi %s1582_s19, %s2030_s19   ;;  %s1515_s18 = sphi %s1580_s18, %s2029_s18  }
   0x6   : > { %s27_s28 = sadd.s32 1, %s1535_s23  ;;  %s30_s29 = sadd.s32 1, %s1539_s24 }
   0x7   : > { %p28_p0 = scmp.ge.s32.totalorder %s27_s28, 4  ;;  %p191_p1 = scmp.ne.s32.totalorder %s1523_s20, %s1519_s19 }
   0x8   : > { %p192_p2 = scmp.eq.s32.totalorder %s1207_s26, 7  ;;  %p197_p5 = scmp.ne.s32.totalorder %s1519_s19, %s1515_s18 }
   0x9   : > { %s2037_s28 = smov (%p28_p0, %s27_s28), 0  ;;  %s2039_s29 = smov (!%p28_p0, %s30_s29), %s1539_s24 }
   0xa   : > { %2022 = sst [smem:[#allocation5_spill]] %s2037_s28  ;;  %s177_s30 = ssub.s32 %s1535_s23, %s2037_s28 }
   0xb   : > { %p1631_p3 = por %p192_p2, %p191_p1  ;;  %p32_p4 = scmp.ge.s32.totalorder %s2039_s29, 2 }
   0xc   : > { %p198_p6 = scmp.eq.s32.totalorder %s1208_s27, 7  ;;  %p1217_p7 = scmp.ge.s32.totalorder %s1543_s25, 1 }
   0xd   : > { %s2041_s29 = smov (%p32_p4, %s2039_s29), 0  ;;  %p276_p9 = scmp.lt.s32.totalorder %s1543_s25, 9 }
   0xe   : > { %2024 = sst [smem:[#allocation6_spill]] %s2041_s29  ;;  %p1640_p8 = por %p198_p6, %p197_p5 }
   0xf   : > { %s176_s8 = ssub.s32 %s1539_s24, %s2041_s29  ;;  %s181_s9 = sadd.s32 1, %s1523_s20 }
  0x10   : > { %s178_s10 = sor.u32 %s177_s30, %s176_s8  ;;  %p277_p10 = pnand %p1217_p7, %p276_p9 }
  0x11   : > { %p179_p11 = scmp.eq.s32.totalorder %s178_s10, 0  ;;  %s1652_s12 = sshll.u32 (!%p277_p10), %s1527_s21, 2 }
  0x12   : > { %280 = sbr.rel (%p277_p10) target bundleno = 421 (0x1a5), region = 40  ;;  %p339_p12 = scmp.lt.s32.totalorder (!%p277_p10), %s1531_s22, 1 }
  0x13   : > { %s1649_s11 = scalar_select %p179_p11, %s1523_s20, %s181_s9  }
  0x14   : > { %p355_p13 = scmp.lt.s32.totalorder (!%p277_p10), %s1652_s12, 15  ;;  %s1220_s17 = sadd.s32 (!%p277_p10), 4294967295, %s1652_s12 }
  0x15   : > { %p337_p0 = scmp.gt.s32.totalorder (!%p277_p10), %s1220_s17, 0  ;;  %p1221_p1 = scmp.lt.s32.totalorder (!%p277_p10), %s1220_s17, 15 }
  0x16   : > { %p381_p2 = scmp.gt.s32.totalorder (!%p277_p10), %s1527_s21, 0  ;;  %s364_s29 = sadd.s32 (!%p277_p10), 4, %s1652_s12 }
  0x17   : > { %s340_s13 = scalar_select %p339_p12, %s1531_s22, 1  ;;  %vm417_vm0 = vcmask 1040384   ;;  %v1241_v0 = vld [vmem:[%s2014_s0 + $0x18] sm:$0x1]  ;;  %v1240_v1 = vld [vmem:[%s2014_s0 + $0x10] sm:$0xff]  ;;  %vm519_vm1 = vcmask 1045504  }
  0x18   : > { %s356_s14 = scalar_select %p355_p13, %s1652_s12, 15  ;;  %1360 = vmatprep.subr.msk.mxu1 %vm417_vm0, %v1241_v0  ;;  %1312 = vmatprep.subr.msk.mxu0 %vm417_vm0, %v1241_v0  ;;  %vm474_vm2 = vcmask 1046528   ;;  %vm564_vm3 = vcmask 23552   ;;  %vm573_vm4 = vcmask 48128   ;;  %vm615_vm5 = vcmask 72704  }
  0x19   : > { %s1658_s15 = sshll.u32 %s340_s13, 5  ;;  %1362 = vmatpush3.msk.msra.mxu1 %vm417_vm0, %v1241_v0  ;;  %1313 = vmatpush3.msk.msra.mxu0 %vm417_vm0, %v1241_v0  ;;  %s1546_s12 = smov 3   ;;  %v1769_v0 = vld [vmem:[%s2014_s0 + $0x8] sm:$0x1]  ;;  %vm1054_vm6 = vcmask 523264  }
  0x1a   : > { %s1230_s16 = sshll.u32 %s356_s14, 1  ;;  %1361 = vmatprep.subr.mxu1 %v1240_v1  ;;  %1314 = vmatprep.subr.mxu0 %v1240_v1  ;;  %p1711_p4 = scmp.lt.s32.totalorder %s364_s29, 15 }
  0x1b   : > { %s359_s26 = sadd.s32 %s1230_s16, %s1658_s15  ;;  %1363 = vmatpush3.msra.mxu1 %v1240_v1  ;;  %1315 = vmatpush3.msra.mxu0 %v1240_v1  ;;  %p382_p5 = scmp.lt.s32.totalorder %s1527_s21, 3  ;;  %v1774_v1 = vld [vmem:[%s2014_s0 + $0x28] sm:$0x1] }
  0x1c   : > { %s1232_s27 = sshll.u32 %s359_s26, 3  ;;  %s2045_s29 = smov (!%p1711_p4, %s364_s29), 15  ;;  %1328 = vmatprep.subr.msk.mxu1 %vm417_vm0, %v1769_v0  ;;  %1344 = vmatprep.subr.msk.mxu0 %vm417_vm0, %v1774_v1 }
  0x1d   : > { %s1671_s13 = scalar_lea.vmem %s2017_s3, %s1232_s27  ;;  %s2047_s29 = smov (!%p1711_p4, %s2045_s29), 15 }
  0x1e   : > { %v401_v2 = vld [vmem:[%s1671_s13 + $0x20] sm:$0xff]  ;;  %v402_v3 = vld [vmem:[%s1671_s13 + $0x28] sm:$0xff]  ;;  %s338_s14 = scalar_select %p337_p0, %s1220_s17, 0  ;;  %v403_v14 = vld [vmem:[%s1671_s13 + $0x30] sm:$0xff] }
  0x1f   : > { %v397_v4 = vld [vmem:[%s1671_s13] sm:$0xff]  ;;  %v427_v5 = vrot.slane %v401_v2, 7  ;;  %v428_v6 = vrot.slane %v402_v3, 7  ;;  %v398_v7 = vld [vmem:[%s1671_s13 + $0x8] sm:$0xff]  ;;  %v404_v22 = vld [vmem:[%s1671_s13 + $0x38] sm:$0xff]  ;;  %s1545_s17 = smov 6  }
  0x20   : > { %v421_v8 = vrot.slane %v397_v4, 7  ;;  %v422_v9 = vrot.slane %v398_v7, 7  ;;  %s2043_s14 = smov (!%p1221_p1, %s338_s14), 15  ;;  %v430_v28 = vrot.slane %v403_v14, 7  ;;  %v431_v32 = vrot.slane %v404_v22, 7  ;;  %v399_v33 = vld [vmem:[%s1671_s13 + $0x10] sm:$0xff] }
  0x21   : > { %v1684_v10 = vsel %vm417_vm0, %v427_v5, %v428_v6  ;;  %v1687_v11 = vsel %vm417_vm0, 0.0, %v427_v5  ;;  %v463_v12 = vsel %vm417_vm0, %v428_v6, 0.0  ;;  %s1226_s28 = sshll.u32 %s2043_s14, 1  ;;  %v400_v34 = vld [vmem:[%s1671_s13 + $0x18] sm:$0xff]  ;;  %v424_v43 = vrot.slane %v399_v33, 7  ;;  %s1237_s13 = sshll.u32 %s2047_s29, 1 }
  0x22   : > { %v1691_v13 = vsel %vm417_vm0, 0.0, %v421_v8  ;;  %v535_v15 = vrot.slane %v1687_v11, 2  ;;  %v536_v16 = vrot.slane %v1684_v10, 2  ;;  %v490_v17 = vrot.slane %v1687_v11, 1  ;;  %s345_s16 = sadd.s32 %s1658_s15, %s1226_s28  ;;  %s373_s14 = sadd.s32 %s1237_s13, %s1658_s15 }
  0x23   : > { %v491_v18 = vrot.slane %v1684_v10, 1  ;;  %v493_v19 = vrot.slane %v463_v12, 1  ;;  %v1700_v20 = vsel %vm417_vm0, %v421_v8, %v422_v9  ;;  %v480_v21 = vrot.slane %v1691_v13, 1  ;;  %s1228_s27 = sshll.u32 %s345_s16, 3  ;;  %s1239_s15 = sshll.u32 %s373_s14, 3 }
  0x24   : > { %v537_v23 = vsel %vm519_vm1, %v535_v15, %v536_v16  ;;  %v481_v25 = vrot.slane %v1700_v20, 1  ;;  %v461_v26 = vsel %vm417_vm0, %v422_v9, 0.0  ;;  %v538_v27 = vrot.slane %v463_v12, 2  ;;  %s347_s9 = scalar_lea.vmem %s2016_s2, %s1228_s27  ;;  %s332_s14 = sand.u32 1, %s1519_s19  }
  0x25   : > { %v492_v24 = vsel %vm474_vm2, %v490_v17, %v491_v18  ;;  %552 = vrot.lane.b32.xlu1 %v537_v23, %s1545_s17  ;;  %v494_v29 = vsel %vm474_vm2, %v491_v18, %v493_v19  ;;  %v483_v31 = vrot.slane %v461_v26, 1  ;;  %v525_v36 = vrot.slane %v1691_v13, 2  ;;  %s1440_s10 = scalar_select %p381_p2, 255, 0 }
  0x26   : > { %507 = vrot.lane.b32.xlu0 %v492_v24, %s1546_s12  ;;  %v482_v30 = vsel %vm474_vm2, %v480_v21, %v481_v25  ;;  %v539_v35 = vsel %vm519_vm1, %v536_v16, %v538_v27  ;;  %v526_v37 = vrot.slane %v1700_v20, 2  ;;  %v528_v38 = vrot.slane %v461_v26, 2  ;;  %s1446_s27 = scalar_select %p382_p5, 255, 0 }
  0x27   : > { %v484_v39 = vsel %vm474_vm2, %v481_v25, %v483_v31  ;;  %v1732_v40 = vsel %vm417_vm0, %v430_v28, %v431_v32  ;;  %v1735_v41 = vsel %vm417_vm0, 0.0, %v430_v28  ;;  %v464_v42 = vsel %vm417_vm0, %v431_v32, 0.0  ;;  %v1441_v52 = vld [vmem:[%s347_s9] sm:%s1440_s10]  ;;  %v1444_v53 = vld [vmem:[%s347_s9 + $0x8] sm:%s1440_s10]  ;;  %s375_s9 = scalar_lea.vmem %s2018_s4, %s1239_s15  ;;  %s1218_s16 = sshll.u32 %s332_s14, 6 }
  0x28   : > { %v425_v44 = vrot.slane %v400_v34, 7  ;;  %v586_v45 = vrot.slane %v1735_v41, 1  ;;  %v587_v46 = vrot.slane %v1732_v40, 1  ;;  %v527_v47 = vsel %vm519_vm1, %v525_v36, %v526_v37  ;;  %v1447_v17 = vld [vmem:[%s375_s9] sm:%s1446_s27]  ;;  %v1450_v18 = vld [vmem:[%s375_s9 + $0x8] sm:%s1446_s27]  ;;  %s1928_s26 = scalar_lea.vmem [#allocation2], %s1218_s16 }
  0x29   : > { %499 = vrot.lane.b32.xlu1 %v482_v30, %s1546_s12  ;;  %v529_v48 = vsel %vm519_vm1, %v526_v37, %v528_v38  ;;  %v589_v49 = vrot.slane %v464_v42, 1  ;;  %v1752_v51 = vsel %vm417_vm0, 0.0, %v424_v43  ;;  %v597_v55 = vrot.slane %v1735_v41, 2  ;;  %s1281_s15 = sshll.u32 %s1527_s21, 3  ;;  %s1275_s27 = sshll.u32 %s1531_s22, 5 }
  0x2a   : > { %509 = vrot.lane.b32.xlu0 %v494_v29, %s1546_s12  ;;  %v1749_v50 = vsel %vm417_vm0, %v424_v43, %v425_v44  ;;  %v588_v54 = vsel %vm474_vm2, %v586_v45, %v587_v46  ;;  %v598_v56 = vrot.slane %v1732_v40, 2  ;;  %v485_v58 = vrot.slane %v1752_v51, 1  ;;  %s1077_s30 = sadd.s32 %s1281_s15, %s1275_s27  ;;  %s1080_s22 = sshll.u32 %s1928_s26, 4  ;;  %s1955_s22 = int_to_ptr.vmem [resolvable:$true] %s1080_s22 }
  0x2b   : > { %v590_v57 = vsel %vm474_vm2, %v587_v46, %v589_v49  ;;  %v486_v59 = vrot.slane %v1749_v50, 1  ;;  %v462_v60 = vsel %vm417_vm0, %v425_v44, 0.0  ;;  %v418_v61 = vrot.slane %v1441_v52, 7  ;;  %s1276_s21 = sshll.u32 %s1077_s30, 7  ;;  %s1451_s10 = scalar_lea.vmem %s1955_s22, 1024 }
  0x2c   : > { %v419_v62 = vrot.slane %v1444_v53, 7  ;;  %v600_v63 = vrot.slane %v464_v42, 2  ;;  %v599_v2 = vsel %vm519_vm1, %v597_v55, %v598_v56  ;;  %v488_v4 = vrot.slane %v462_v60, 1  ;;  %p1452_p6 = scmp.ne.s32.totalorder %s1955_s22, %s1451_s10  ;;  %s1547_s13 = smov [#allocation2]  }
  0x2d   : > { %501 = vrot.lane.b32.xlu1 %v484_v39, %s1546_s12  ;;  %v487_v3 = vsel %vm474_vm2, %v485_v58, %v486_v59  ;;  %v1786_v6 = vsel %vm417_vm0, 0.0, %v418_v61  ;;  %v530_v8 = vrot.slane %v1752_v51, 2  ;;  %v531_v12 = vrot.slane %v1749_v50, 2  ;;  %s1455_s28 = sshll.u32 %s1547_s13, 4  ;;  %s1456_s28 = int_to_ptr.vmem [resolvable:$false] %s1455_s28 }
  0x2e   : > { %554 = vrot.lane.b32.xlu0 %v539_v35, %s1545_s17  ;;  %v1783_v5 = vsel %vm417_vm0, %v418_v61, %v419_v62  ;;  %v601_v7 = vsel %vm519_vm1, %v598_v56, %v600_v63  ;;  %v489_v9 = vsel %vm474_vm2, %v486_v59, %v488_v4  ;;  %v475_v14 = vrot.slane %v1786_v6, 1  ;;  %p1453_p7 = pnand %p1452_p6, %p1631_p3  ;;  %s1457_s29 = scalar_lea.vmem %s1456_s28, 2048 }
  0x2f   : > { %v476_v15 = vrot.slane %v1783_v5, 1  ;;  %v460_v16 = vsel %vm417_vm0, %v419_v62, 0.0  ;;  %v532_v19 = vsel %vm519_vm1, %v530_v8, %v531_v12  ;;  %v533_v22 = vrot.slane %v462_v60, 2  ;;  %p1458_p10 = scmp.lt.s32.totalorder %s1955_s22, %s1456_s28  ;;  %p1459_p11 = scmp.lt.s32.totalorder %s1457_s29, %s1451_s10 }
  0x30   : > { %v478_v23 = vrot.slane %v460_v16, 1  ;;  %v433_v24 = vrot.slane %v1447_v17, 7  ;;  %v434_v25 = vrot.slane %v1450_v18, 7  ;;  %v520_v26 = vrot.slane %v1786_v6, 2  ;;  %p1454_p9 = pneg %p1453_p7 }
  0x31   : > { %546 = vrot.lane.b32.xlu1 %v529_v48, %s1545_s17  ;;  %v477_v21 = vsel %vm474_vm2, %v475_v14, %v476_v15  ;;  %v521_v27 = vrot.slane %v1783_v5, 2  ;;  %v534_v28 = vsel %vm519_vm1, %v531_v12, %v533_v22  ;;  %v523_v30 = vrot.slane %v460_v16, 2  ;;  %p1460_p12 = por %p1459_p11, %p1458_p10 }
  0x32   : > { %544 = vrot.lane.b32.xlu0 %v527_v47, %s1545_s17  ;;  %v479_v29 = vsel %vm474_vm2, %v476_v15, %v478_v23  ;;  %v1813_v31 = vsel %vm417_vm0, %v433_v24, %v434_v25  ;;  %v1816_v32 = vsel %vm417_vm0, 0.0, %v433_v24  ;;  %v465_v33 = vsel %vm417_vm0, %v434_v25, 0.0 }
  0x33   : > { %v522_v34 = vsel %vm519_vm1, %v520_v26, %v521_v27  ;;  %v524_v35 = vsel %vm519_vm1, %v521_v27, %v523_v30  ;;  %v864_v36 = vrot.slane %v1816_v32, 1  ;;  %v865_v37 = vrot.slane %v1813_v31, 1  ;;  %p1461_p13 = pnand %p1460_p12, %p1454_p9 }
  0x34   : > { %v867_v38 = vrot.slane %v465_v33, 1  ;;  %v875_v39 = vrot.slane %v1816_v32, 2  ;;  %v876_v44 = vrot.slane %v1813_v31, 2  ;;  %v878_v45 = vrot.slane %v465_v33, 2 }
  0x35   : > { %593 = vrot.lane.b32.xlu1 %v590_v57, %s1546_s12  ;;  %v866_v42 = vsel %vm474_vm2, %v864_v36, %v865_v37 }
  0x36   : > { %591 = vrot.lane.b32.xlu0 %v588_v54, %s1546_s12  ;;  %v868_v43 = vsel %vm474_vm2, %v865_v37, %v867_v38  ;;  %v877_v46 = vsel %vm519_vm1, %v875_v39, %v876_v44  ;;  %v879_v47 = vsel %vm519_vm1, %v876_v44, %v878_v45 }
  0x39   : > { %503 = vrot.lane.b32.xlu1 %v487_v3, %s1546_s12 }
  0x3a   : > { %602 = vrot.lane.b32.xlu0 %v599_v2, %s1545_s17 }
  0x3d   : > { %505 = vrot.lane.b32.xlu1 %v489_v9, %s1546_s12 }
  0x3e   : > { %604 = vrot.lane.b32.xlu0 %v601_v7, %s1545_s17 }
  0x41   : > { %495 = vrot.lane.b32.xlu1 %v477_v21, %s1546_s12 }
  0x42   : > { %548 = vrot.lane.b32.xlu0 %v532_v19, %s1545_s17 }
  0x45   : > { %497 = vrot.lane.b32.xlu1 %v479_v29, %s1546_s12 }
  0x46   : > { %550 = vrot.lane.b32.xlu0 %v534_v28, %s1545_s17 }
  0x49   : > { %542 = vrot.lane.b32.xlu1 %v524_v35, %s1545_s17 }
  0x4a   : > { %540 = vrot.lane.b32.xlu0 %v522_v34, %s1545_s17 }
  0x4d   : > { %871 = vrot.lane.b32.xlu1 %v868_v43, %s1546_s12 }
  0x4e   : > { %869 = vrot.lane.b32.xlu0 %v866_v42, %s1546_s12  ;;  %s1963_s12 = scalar_lea.sflag [#allocation3], %s332_s14 }
  0x51   : > { %882 = vrot.lane.b32.xlu1 %v879_v47, %s1545_s17 }
  0x52   : > { %880 = vrot.lane.b32.xlu0 %v877_v46, %s1545_s17  ;;  %v1921_v46 = vld [vmem:[%s2015_s1] ss:$0 sm:$0xff]  ;;  %s1953_s17 = scalar_lea.hbm %s2019_s5, %s1276_s21 }
  0x97   : > { %v553_v48 = vpop.permute.xlu1 %552 }
  0x98   : > { %v508_v49 = vpop.permute.xlu0 %507 }
  0x99   : > { %v571_v52 = vsel %vm564_vm3, %v1687_v11, %v508_v49  ;;  %v582_v11 = vld [vmem:[%s2014_s0] sm:$0xff] }
  0x9a   : > { %v1840_v53 = vsel %vm573_vm4, %v571_v52, %v553_v48 }
  0x9b   : > { %1322 = vmatprep.mubr.msk.f32.mxu1 %vm615_vm5, %v1840_v53  ;;  %v500_v55 = vpop.permute.xlu1 %499 }
  0x9c   : > { %v510_v54 = vpop.permute.xlu0 %509  ;;  %v567_v60 = vsel %vm564_vm3, %v1691_v13, %v500_v55 }
  0x9d   : > { %v572_v56 = vsel %vm564_vm3, %v1684_v10, %v510_v54 }
  0x9f   : > { %v502_v58 = vpop.permute.xlu1 %501 }
  0xa0   : > { %v555_v57 = vpop.permute.xlu0 %554  ;;  %v568_v10 = vsel %vm564_vm3, %v1700_v20, %v502_v58 }
  0xa1   : > { %v1847_v59 = vsel %vm573_vm4, %v572_v56, %v555_v57 }
  0xa2   : > { %1323 = vmatmul.mubr.msk.f32.vlgmr.msra.gmra.mxu1 %vm615_vm5, %v1847_v59 }
  0xa3   : > { %1329 = vmatpush3.msk.msra.mxu1 %vm417_vm0, %v1769_v0  ;;  %v547_v62 = vpop.permute.xlu1 %546  ;;  %v1260_v0 = vld [vmem:[%s2014_s0 + $0x20] sm:$0xff] }
  0xa4   : > { %v545_v61 = vpop.permute.xlu0 %544  ;;  %1330 = vmatprep.subr.mxu1 %v582_v11  ;;  %v577_v63 = vsel %vm573_vm4, %v568_v10, %v547_v62 }
  0xa5   : > { %v576_v2 = vsel %vm573_vm4, %v567_v60, %v545_v61  ;;  %1331 = vmatpush3.msra.mxu1 %v582_v11 }
  0xa6   : > { %1316 = vmatprep.mubr.msk.f32.mxu0 %vm615_vm5, %v576_v2 }
  0xa7   : > { %1317 = vmatmul.mubr.msk.f32.vlgmr.msra.gmra.mxu0 %vm615_vm5, %v577_v63  ;;  %v594_v3 = vpop.permute.xlu1 %593 }
  0xa8   : > { %v592_v13 = vpop.permute.xlu0 %591  ;;  %1345 = vmatpush3.msk.msra.mxu0 %vm417_vm0, %v1774_v1  ;;  %v609_v9 = vsel %vm564_vm3, %v1732_v40, %v594_v3 }
  0xa9   : > { %1346 = vmatprep.subr.mxu0 %v1260_v0  ;;  %v608_v20 = vsel %vm564_vm3, %v1735_v41, %v592_v13 }
  0xaa   : > { %1347 = vmatpush3.msra.mxu0 %v1260_v0 }
  0xab   : > { %v504_v7 = vpop.permute.xlu1 %503 }
  0xac   : > { %v603_v4 = vpop.permute.xlu0 %602  ;;  %v569_v1 = vsel %vm564_vm3, %v1752_v51, %v504_v7 }
  0xad   : > { %v610_v8 = vsel %vm573_vm4, %v608_v20, %v603_v4 }
  0xae   : > { %1325 = vmatprep.mubr.msk.f32.mxu1 %vm615_vm5, %v610_v8 }
  0xaf   : > { %v506_v14 = vpop.permute.xlu1 %505 }
  0xb0   : > { %v605_v12 = vpop.permute.xlu0 %604  ;;  %v570_v18 = vsel %vm564_vm3, %v1749_v50, %v506_v14 }
  0xb1   : > { %v611_v15 = vsel %vm573_vm4, %v609_v9, %v605_v12 }
  0xb2   : > { %1326 = vmatmul.mubr.msk.f32.gmra.mxu1 %vm615_vm5, %v611_v15 }
  0xb3   : > { %v496_v41 = vpop.permute.xlu1 %495 }
  0xb4   : > { %v549_v16 = vpop.permute.xlu0 %548  ;;  %v565_v51 = vsel %vm564_vm3, %v1786_v6, %v496_v41 }
  0xb5   : > { %v578_v17 = vsel %vm573_vm4, %v569_v1, %v549_v16 }
  0xb6   : > { %1319 = vmatprep.mubr.msk.f32.mxu0 %vm615_vm5, %v578_v17 }
  0xb7   : > { %v498_v40 = vpop.permute.xlu1 %497 }
  0xb8   : > { %v551_v19 = vpop.permute.xlu0 %550  ;;  %v566_v22 = vsel %vm564_vm3, %v1783_v5, %v498_v40 }
  0xb9   : > { %v579_v21 = vsel %vm573_vm4, %v570_v18, %v551_v19 }
  0xba   : > { %1320 = vmatmul.mubr.msk.f32.gmra.mxu0 %vm615_vm5, %v579_v21 }
  0xbb   : > { %1348 = vmatprep.mubr.msk.f32.mxu0 %vm615_vm5, %v578_v17  ;;  %v543_v24 = vpop.permute.xlu1 %542 }
  0xbc   : > { %v541_v23 = vpop.permute.xlu0 %540  ;;  %v575_v50 = vsel %vm573_vm4, %v566_v22, %v543_v24 }
  0xbd   : > { %v574_v25 = vsel %vm573_vm4, %v565_v51, %v541_v23 }
  0xbe   : > { %1332 = vmatprep.mubr.msk.f32.mxu1 %vm615_vm5, %v574_v25  ;;  %1349 = vmatmul.mubr.msk.f32.vlgmr.msra.gmra.mxu0 %vm615_vm5, %v579_v21 }
  0xbf   : > { %1333 = vmatmul.mubr.msk.f32.vlgmr.msra.gmra.mxu1 %vm615_vm5, %v575_v50  ;;  %1351 = vmatprep.mubr.msk.f32.mxu0 %vm615_vm5, %v1840_v53  ;;  %v872_v26 = vpop.permute.xlu1 %871 }
  0xc0   : > { %1335 = vmatprep.mubr.msk.f32.mxu1 %vm615_vm5, %v576_v2  ;;  %v870_v6 = vpop.permute.xlu0 %869  ;;  %v887_v27 = vsel %vm564_vm3, %v1813_v31, %v872_v26 }
  0xc1   : > { %v886_v5 = vsel %vm564_vm3, %v1816_v32, %v870_v6 }
  0xc2   : > { %1352 = vmatmul.mubr.msk.f32.gmra.mxu0 %vm615_vm5, %v1847_v59 }
  0xc3   : > { %1354 = vmatprep.mubr.msk.f32.mxu0 %vm615_vm5, %v610_v8  ;;  %1336 = vmatmul.mubr.msk.f32.gmra.mxu1 %vm615_vm5, %v577_v63  ;;  %v883_v29 = vpop.permute.xlu1 %882 }
  0xc4   : > { %1338 = vmatprep.mubr.msk.f32.mxu1 %vm615_vm5, %v578_v17  ;;  %v881_v28 = vpop.permute.xlu0 %880  ;;  %v889_v32 = vsel %vm573_vm4, %v887_v27, %v883_v29 }
  0xc5   : > { %v888_v30 = vsel %vm573_vm4, %v886_v5, %v881_v28 }
  0xc6   : > { %1355 = vmatmul.mubr.msk.f32.gmra.mxu0 %vm615_vm5, %v611_v15 }
  0xc7   : > { %1339 = vmatmul.mubr.msk.f32.gmra.mxu1 %vm615_vm5, %v579_v21  ;;  %1357 = vmatprep.mubr.msk.f32.mxu0 %vm615_vm5, %v888_v30 }
  0xc8   : > { %1341 = vmatprep.mubr.msk.f32.mxu1 %vm615_vm5, %v1840_v53 }
  0xca   : > { %1358 = vmatmul.mubr.msk.f32.gmra.mxu0 %vm615_vm5, %v889_v32 }
  0xcb   : > { %1342 = vmatmul.mubr.msk.f32.gmra.mxu1 %vm615_vm5, %v1847_v59 }
 0x162   : > { %v1324_v31 = vpop.f32.mrf.mxu1 }
 0x164   : > { %v729_v34 = vpop.f32.mrf.mxu1 }
 0x167   : > { %v1318_v33 = vpop.f32.mrf.mxu0 }
 0x169   : > { %v709_v35 = vpop.f32.mrf.mxu0 }
 0x172   : > { %v1327_v36 = vpop.f32.mrf.mxu1 }
 0x174   : > { %v739_v39 = vpop.f32.mrf.mxu1 }
 0x17a   : > { %v1321_v37 = vpop.f32.mrf.mxu0 }
 0x17c   : > { %v719_v38 = vpop.f32.mrf.mxu0 }
 0x17e   : > { %v1350_v42 = vpop.f32.mrf.mxu0 }
 0x17f   : > { %v1334_v43 = vpop.f32.mrf.mxu1 }
 0x180   : > { %v829_v44 = vadd.f32 %v1334_v43, %v1318_v33  ;;  %v968_v45 = vpop.f32.mrf.mxu0 }
 0x181   : > { %v823_v47 = vpop.f32.mrf.mxu1 }
 0x182   : > { %v1008_v48 = vadd.f32 %v1350_v42, %v829_v44  ;;  %v824_v49 = vadd.f32 %v823_v47, %v709_v35  ;;  %v1353_v52 = vpop.f32.mrf.mxu0 }
 0x183   : > { %v1337_v53 = vpop.f32.mrf.mxu1 }
 0x184   : > { %v1023_v54 = vadd.f32 %v1921_v46, %v1008_v48  ;;  %v1007_v55 = vadd.f32 %v968_v45, %v824_v49  ;;  %v839_v56 = vadd.f32 %v1337_v53, %v1321_v37  ;;  %v978_v57 = vpop.f32.mrf.mxu0 }
 0x185   : > { %v833_v58 = vpop.f32.mrf.mxu1 }
 0x186   : > { %vm1031_vm7 = vcmp.ge.f32.partialorder %v1023_v54, 0.0  ;;  %v1039_v59 = vmul.f32 0.2, %v1023_v54  ;;  %v1022_v11 = vadd.f32 %v1921_v46, %v1007_v55  ;;  %v1010_v60 = vadd.f32 %v1353_v52, %v839_v56  ;;  %v1356_v10 = vpop.f32.mrf.mxu0 }
 0x187   : > { %v834_v61 = vadd.f32 %v833_v58, %v719_v38  ;;  %v1340_v62 = vpop.f32.mrf.mxu1 }
 0x188   : > { %v1047_v63 = vsel %vm1031_vm7, %v1023_v54, %v1039_v59  ;;  %vm1030_vm8 = vcmp.ge.f32.partialorder %v1022_v11, 0.0  ;;  %v1038_v2 = vmul.f32 0.2, %v1022_v11  ;;  %v1025_v0 = vadd.f32 %v1921_v46, %v1010_v60  ;;  %v988_v13 = vpop.f32.mrf.mxu0 }
 0x189   : > { %1056 = vst.msk [vmem:[%s1928_s26 + $0x8] sm:$0xff] %vm1054_vm6, %v1047_v63  ;;  %v1009_v3 = vadd.f32 %v978_v57, %v834_v61  ;;  %v849_v20 = vadd.f32 %v1340_v62, %v1324_v31  ;;  %v843_v4 = vpop.f32.mrf.mxu1 }
 0x18a   : > { %v1046_v7 = vsel %vm1030_vm8, %v1022_v11, %v1038_v2  ;;  %vm1033_vm9 = vcmp.ge.f32.partialorder %v1025_v0, 0.0  ;;  %v1041_v8 = vmul.f32 0.2, %v1025_v0  ;;  %v844_v9 = vadd.f32 %v843_v4, %v729_v34  ;;  %v1359_v15 = vpop.f32.mrf.mxu0 }
 0x18b   : > { %1055 = vst.msk [vmem:[%s1928_s26] sm:$0xff] %vm1054_vm6, %v1046_v7  ;;  %v1024_v12 = vadd.f32 %v1921_v46, %v1009_v3  ;;  %v1012_v14 = vadd.f32 %v1356_v10, %v849_v20  ;;  %v1343_v1 = vpop.f32.mrf.mxu1 }
 0x18c   : > { %v1049_v16 = vsel %vm1033_vm9, %v1025_v0, %v1041_v8  ;;  %v1011_v41 = vadd.f32 %v988_v13, %v844_v9  ;;  %v859_v17 = vadd.f32 %v1343_v1, %v1327_v36  ;;  %v998_v25 = vpop.f32.mrf.mxu0 }
 0x18d   : > { %1058 = vst.msk [vmem:[%s1928_s26 + $0x18] sm:$0xff] %vm1054_vm6, %v1049_v16  ;;  %vm1032_vm10 = vcmp.ge.f32.partialorder %v1024_v12, 0.0  ;;  %v1040_v18 = vmul.f32 0.2, %v1024_v12  ;;  %v1027_v19 = vadd.f32 %v1921_v46, %v1012_v14  ;;  %v853_v40 = vpop.f32.mrf.mxu1 }
 0x18e   : > { %v1026_v21 = vadd.f32 %v1921_v46, %v1011_v41  ;;  %v1014_v51 = vadd.f32 %v1359_v15, %v859_v17  ;;  %v854_v22 = vadd.f32 %v853_v40, %v739_v39 }
 0x18f   : > { %v1048_v23 = vsel %vm1032_vm10, %v1024_v12, %v1040_v18  ;;  %vm1035_vm11 = vcmp.ge.f32.partialorder %v1027_v19, 0.0  ;;  %v1043_v24 = vmul.f32 0.2, %v1027_v19 }
 0x190   : > { %1057 = vst.msk [vmem:[%s1928_s26 + $0x10] sm:$0xff] %vm1054_vm6, %v1048_v23  ;;  %vm1034_vm12 = vcmp.ge.f32.partialorder %v1026_v21, 0.0  ;;  %v1042_v50 = vmul.f32 0.2, %v1026_v21  ;;  %v1029_v6 = vadd.f32 %v1921_v46, %v1014_v51  ;;  %v1013_v26 = vadd.f32 %v998_v25, %v854_v22 }
 0x191   : > { %v1051_v5 = vsel %vm1035_vm11, %v1027_v19, %v1043_v24 }
 0x192   : > { %1060 = vst.msk [vmem:[%s1928_s26 + $0x28] sm:$0xff] %vm1054_vm6, %v1051_v5  ;;  %v1050_v27 = vsel %vm1034_vm12, %v1026_v21, %v1042_v50  ;;  %vm1037_vm13 = vcmp.ge.f32.partialorder %v1029_v6, 0.0  ;;  %v1045_v28 = vmul.f32 0.2, %v1029_v6  ;;  %v1028_v29 = vadd.f32 %v1921_v46, %v1013_v26 }
 0x193   : > { %1059 = vst.msk [vmem:[%s1928_s26 + $0x20] sm:$0xff] %vm1054_vm6, %v1050_v27 }
 0x194   : > { %v1053_v30 = vsel %vm1037_vm13, %v1029_v6, %v1045_v28  ;;  %vm1036_vm14 = vcmp.ge.f32.partialorder %v1028_v29, 0.0  ;;  %v1044_v32 = vmul.f32 0.2, %v1028_v29 }
 0x195   : > { %1062 = vst.msk [vmem:[%s1928_s26 + $0x38] sm:$0xff] %vm1054_vm6, %v1053_v30 }
 0x196   : > { %v1052_v31 = vsel %vm1036_vm14, %v1028_v29, %v1044_v32 }
 0x197   : > { %1061 = vst.msk [vmem:[%s1928_s26 + $0x30] sm:$0xff] %vm1054_vm6, %v1052_v31 }
 0x198   : > { %1464 = shalt.err (!%p1461_p13)
}
 0x199   : > { %s1465_s14 = scalar_lea.hbm %s1953_s17, 1024  ;;  %s1469_s15 = scalar_lea.hbm %s2019_s5, 8192 }
 0x19a   : > { %p1466_p0 = scmp.ne.s32.totalorder %s1953_s17, %s1465_s14  ;;  %p1470_p4 = scmp.lt.s32.totalorder %s1953_s17, %s2019_s5 }
 0x19b   : > { %p1471_p5 = scmp.lt.s32.totalorder %s1469_s15, %s1465_s14 }
 0x19c   : > { %p1467_p1 = pnand %p1466_p0, %p1631_p3 }
 0x19d   : > { %p1472_p6 = por %p1471_p5, %p1470_p4 }
 0x19e   : > { %p1468_p2 = pneg %p1467_p1 }
 0x1a0   : > { %p1473_p7 = pnand %p1472_p6, %p1468_p2 }
 0x1a2   : > { %1476 = shalt.err (!%p1473_p7)
}
 0x1a3   : > { %s1548_s21 = smov 128   ;;  %s1549_s8 = smov 8  }
 0x1a4   : > { %1364 = dma.vmem_to_hbm [thread:$0]  (%p1631_p3), %s1955_s22, 1024, %s1953_s17, %s1963_s12, %s1548_s21, %s1548_s21, %s1549_s8  }
 0x1a5 PF: > { %p1370_p9 = scmp.ge.s32.totalorder %s1543_s25, 2  ;;  %s1095_s9 = sand.u32 1, %s1515_s18  }
 0x1a6   : > { %s1096_s10 = scalar_lea.sflag [#allocation3], %s1095_s9 }
 0x1a7   : > { %p1367_p10 = pnand %p1370_p9, %p1640_p8 }
 0x1a9   : > { %p1368_p11 = pneg %p1367_p10 }
 0x1ab   : > { %1510 = dma.done.wait (%p1368_p11), %s1096_s10, 1024  }
 0x1ac   : > { %1512 = vsyncadd (%p1368_p11), %s1096_s10, 4294966272  ;;  %s18_s25 = sadd.s32 1, %s1543_s25   ;;  %s2027_s6 = sld [smem:[#allocation5_spill]] }
 0x1ad   : > { %p15_p12 = scmp.ge.s32.totalorder %s18_s25, 10   ;;  %s2028_s17 = sld [smem:[#allocation6_spill]] }
 0x1ae   : > { %s2029_s18 = smov %s1519_s19  ;;  %s2030_s19 = smov %s1523_s20 }
 0x1af   : > { %s2031_s20 = smov %s1649_s11  ;;  %s2032_s21 = smov %s1535_s23 }
 0x1b0   : > { %s2033_s22 = smov %s1539_s24  ;;  %17 = sbr.rel (!%p15_p12) target bundleno = 5 (0x5), region = 83 }
 0x1b2   : > { %s2034_s23 = smov %s2027_s6 }
 0x1b3   : > { %s2035_s24 = smov %s2028_s17 }
 0x1b5   :  { %1101 = vsyncpa [#allocation3], 1 }
 0x1b6   :  { %1103 = vsyncpa [#allocation3 + $0x1], 1 }

</bundles_post_ra>
